<compile_context>
chip_gen: v7x
topology: tpu7x:2x2x1
jax: 0.10.0
libtpu: 0.0.40
codegen_flags: <defaults>
</compile_context>

<pallas_src>
import functools

import numpy as np
import jax
import jax.numpy as jnp
from jax.experimental import pallas as pl
from jax.experimental.pallas import tpu as pltpu

OUTPUT_NODES_MODEL_ONE = 32
HIDDEN_NODES_MODEL_TWO = [8, 4, 2]
OUTPUT_NODES_MODEL_TWO = 1
HIDDEN_ONE = 64
BN_EPS = 1e-5
LANE = 128


def _round_up(v, m):
    return ((v + m - 1) // m) * m


# ----------------------------- Pallas kernel --------------------------------
def _fused_kernel(x_ref, wa_ref, wb_ref, wc_ref, wf_ref, bias_ref, out_ref,
                  *, n1, n2, n3, nout, o1, o2, o3, o4):
    f32 = jnp.float32
    cdt = wa_ref.dtype           # compute dtype for MXU operands (bfloat16)

    # Layer 1: merged [x1|x2] @ merged [WA1;WA2]  (Model_one layer-1 and every
    # group's layer-1 block-packed; the x2 column gather is absorbed into the
    # row layout of the packed weight).
    h = jnp.dot(x_ref[...], wa_ref[...], preferred_element_type=f32)
    h = jnp.maximum(h + bias_ref[:, o1:o1 + n1], 0.0).astype(cdt)   # [B, N1]

    # Layer 2: identity block carries Model_one hidden (>=0, ReLU is a no-op),
    # block-diagonal Linear(8,4) per group elsewhere.
    h = jnp.dot(h, wb_ref[...], preferred_element_type=f32)
    h = jnp.maximum(h + bias_ref[:, o2:o2 + n2], 0.0).astype(cdt)   # [B, N2]

    # Layer 3: identity block + block-diagonal Linear(4,2) per group.
    h = jnp.dot(h, wc_ref[...], preferred_element_type=f32)
    h = jnp.maximum(h + bias_ref[:, o3:o3 + n3], 0.0).astype(cdt)   # [B, N3]

    # Fused (eval BatchNorm + output Linear + final Linear) for both sub-models.
    out_ref[...] = (jnp.dot(h, wf_ref[...], preferred_element_type=f32)
                    + bias_ref[:, o4:o4 + nout])                    # [B, nout]


# ------------------------------ raw parameters -------------------------------
def _linear_params(key, fan_in, fan_out):
    """PyTorch-style uniform init; weight returned already transposed [in, out]."""
    kw, kb = jax.random.split(key)
    bound = 1.0 / np.sqrt(fan_in)
    w = jax.random.uniform(kw, (fan_in, fan_out), jnp.float32, -bound, bound)
    b = jax.random.uniform(kb, (1, fan_out), jnp.float32, -bound, bound)
    return w, b


def _bn_eval_scale_shift(num_features):
    # default BatchNorm1d init: gamma=1, beta=0, running_mean=0, running_var=1
    gamma = np.ones((1, num_features), np.float32)
    beta = np.zeros((1, num_features), np.float32)
    rmean = np.zeros((1, num_features), np.float32)
    rvar = np.ones((1, num_features), np.float32)
    scale = gamma / np.sqrt(rvar + BN_EPS)
    shift = beta - rmean * scale
    return jnp.asarray(scale), jnp.asarray(shift)


def build_raw_params(key, input_size_model_one, m_groups, output_size):
    """Unfused parameters mirroring the PyTorch module (eval mode)."""
    groups = sorted(set(m_groups))
    counts = [sum(1 for g in m_groups if g == grp) for grp in groups]

    keys = jax.random.split(key, 3 + 4 * len(groups))
    ki = iter(keys)

    p = {}
    # Model_one
    p["w1a"], p["b1a"] = _linear_params(next(ki), input_size_model_one, HIDDEN_ONE)
    p["s1"], p["t1"] = _bn_eval_scale_shift(HIDDEN_ONE)
    p["w1o"], p["b1o"] = _linear_params(next(ki), HIDDEN_ONE, OUTPUT_NODES_MODEL_ONE)

    # Model_two, per group (lists — counts may differ between groups)
    for name in ("w2a", "b2a", "w2b", "b2b", "w2c", "b2c", "w2o", "b2o", "s2", "t2"):
        p[name] = []
    for cnt in counts:
        wa, ba = _linear_params(next(ki), cnt, HIDDEN_NODES_MODEL_TWO[0])
        wb, bb = _linear_params(next(ki), HIDDEN_NODES_MODEL_TWO[0], HIDDEN_NODES_MODEL_TWO[1])
        wc, bc = _linear_params(next(ki), HIDDEN_NODES_MODEL_TWO[1], HIDDEN_NODES_MODEL_TWO[2])
        wo, bo = _linear_params(next(ki), HIDDEN_NODES_MODEL_TWO[2], OUTPUT_NODES_MODEL_TWO)
        s2, t2 = _bn_eval_scale_shift(HIDDEN_NODES_MODEL_TWO[-1])
        p["w2a"].append(wa); p["b2a"].append(ba)
        p["w2b"].append(wb); p["b2b"].append(bb)
        p["w2c"].append(wc); p["b2c"].append(bc)
        p["w2o"].append(wo); p["b2o"].append(bo)
        p["s2"].append(s2); p["t2"].append(t2)

    final_in = OUTPUT_NODES_MODEL_ONE + OUTPUT_NODES_MODEL_TWO * len(groups)
    p["wf"], p["bf"] = _linear_params(next(ki), final_in, output_size)
    return p


# --------------------- host-side packing / folding (once) --------------------
def pack_params(raw, m_groups, output_size, compute_dtype=jnp.bfloat16):
    """Fold BN + output Linear + final Linear, build merged / block-diag weights.

    All folding is done in float32 on the host (runs once per model); weights
    are then cast to bfloat16 for the MXU, biases stay float32 in one slab.
    """
    assert m_groups, "empty m_groups not supported"  # TODO(synk): no-group path
    groups = sorted(set(m_groups))
    G = len(groups)
    M = len(m_groups)
    H2 = HIDDEN_NODES_MODEL_TWO
    D1 = raw["w1a"].shape[0]
    N1 = HIDDEN_ONE + G * H2[0]
    N2 = HIDDEN_ONE + G * H2[1]
    N3 = HIDDEN_ONE + G * H2[2]
    # TODO(synk): once G >= 9 (N1 > 128) drop the 64-wide identity carry and
    # fold the Model_one tail as a separate [64, output] term added after
    # layer 1, to keep every stage inside a single 128-lane tile.

    npf = lambda a: np.asarray(a, np.float32)
    w1a, b1a = npf(raw["w1a"]), npf(raw["b1a"])
    s1, t1 = npf(raw["s1"]), npf(raw["t1"])
    w1o, b1o = npf(raw["w1o"]), npf(raw["b1o"])
    wf, bf = npf(raw["wf"]), npf(raw["bf"])

    WA = np.zeros((D1 + M, N1), np.float32)   # merged [x1|x2] layer-1 weight
    BA = np.zeros((1, N1), np.float32)
    WB = np.zeros((N1, N2), np.float32)
    BB = np.zeros((1, N2), np.float32)
    WC = np.zeros((N2, N3), np.float32)
    BC = np.zeros((1, N3), np.float32)
    WF = np.zeros((N3, output_size), np.float32)

    # --- Model_one: layer 1, identity carry-through, fused (BN+out+final) tail.
    WA[:D1, :HIDDEN_ONE] = w1a
    BA[:, :HIDDEN_ONE] = b1a
    WB[:HIDDEN_ONE, :HIDDEN_ONE] = np.eye(HIDDEN_ONE, dtype=np.float32)
    WC[:HIDDEN_ONE, :HIDDEN_ONE] = np.eye(HIDDEN_ONE, dtype=np.float32)
    w1o_f = s1.reshape(-1, 1) * w1o                 # fold eval BN into output Linear
    b1o_f = t1 @ w1o + b1o
    wf_top = wf[:OUTPUT_NODES_MODEL_ONE, :]
    WF[:HIDDEN_ONE, :] = w1o_f @ wf_top             # fold final Linear
    BF = b1o_f @ wf_top + bf

    # --- Model_two per group: block-diagonal placement + fused tail.
    for gi, grp in enumerate(groups):
        idx = [i for i, g in enumerate(m_groups) if g == grp]
        w2a, b2a = npf(raw["w2a"][gi]), npf(raw["b2a"][gi])
        w2b, b2b = npf(raw["w2b"][gi]), npf(raw["b2b"][gi])
        w2c, b2c = npf(raw["w2c"][gi]), npf(raw["b2c"][gi])
        w2o, b2o = npf(raw["w2o"][gi]), npf(raw["b2o"][gi])
        s2, t2 = npf(raw["s2"][gi]), npf(raw["t2"][gi])

        c1 = slice(HIDDEN_ONE + gi * H2[0], HIDDEN_ONE + (gi + 1) * H2[0])
        c2 = slice(HIDDEN_ONE + gi * H2[1], HIDDEN_ONE + (gi + 1) * H2[1])
        c3 = slice(HIDDEN_ONE + gi * H2[2], HIDDEN_ONE + (gi + 1) * H2[2])

        # x2 column gather absorbed into the row layout of the merged weight
        for j, col in enumerate(idx):
            WA[D1 + col, c1] = w2a[j, :]
        BA[:, c1] = b2a
        WB[c1, c2] = w2b
        BB[:, c2] = b2b
        WC[c2, c3] = w2c
        BC[:, c3] = b2c

        wf_row = wf[OUTPUT_NODES_MODEL_ONE + gi:OUTPUT_NODES_MODEL_ONE + gi + 1, :]
        w2o_f = s2.reshape(-1, 1) * w2o             # fold eval BN
        b2o_f = t2 @ w2o + b2o
        WF[c3, :] = w2o_f @ wf_row                  # fold final Linear
        BF = BF + b2o_f @ wf_row

    # --- single bias slab, each segment starting at a 128-lane boundary ------
    o1 = 0
    o2 = _round_up(N1, LANE)
    o3 = o2 + _round_up(N2, LANE)
    o4 = o3 + _round_up(N3, LANE)
    total = o4 + _round_up(output_size, LANE)
    BIAS = np.zeros((1, total), np.float32)
    BIAS[:, o1:o1 + N1] = BA
    BIAS[:, o2:o2 + N2] = BB
    BIAS[:, o3:o3 + N3] = BC
    BIAS[:, o4:o4 + output_size] = BF

    return {
        "wa": jnp.asarray(WA, compute_dtype),
        "wb": jnp.asarray(WB, compute_dtype),
        "wc": jnp.asarray(WC, compute_dtype),
        "wf": jnp.asarray(WF, compute_dtype),
        "bias": jnp.asarray(BIAS, jnp.float32),
        "meta": dict(n1=N1, n2=N2, n3=N3, nout=output_size,
                     o1=o1, o2=o2, o3=o3, o4=o4),
    }


# ------------------------------ forward (glue) -------------------------------
def _pick_batch_tile(batch):
    # Single grid step for small batches (rounded to a sublane multiple of 8);
    # 1024-row tiles otherwise (per-step overhead amortised, still only ~1-2 MiB
    # of double-buffered lane-padded activations -> safe on v5e's 16 MiB scoped
    # VMEM and v7x's 64 MiB physical VMEM with the explicit limit below).
    if batch <= 1024:
        return max(8, _round_up(batch, 8))
    return 1024


def integrated_forward(packed, x1, x2):
    B = x1.shape[0]
    meta = packed["meta"]
    nout = meta["nout"]

    # Merge the two inputs once on the host; pad batch to a tile multiple.
    x = jnp.concatenate([x1, x2], axis=1)
    TB = _pick_batch_tile(B)
    B_pad = _round_up(B, TB)
    if B_pad != B:
        x = jnp.pad(x, ((0, B_pad - B), (0, 0)))
    x = x.astype(packed["wa"].dtype)
    Dx = x.shape[1]
    grid = (B_pad // TB,)

    kernel = functools.partial(_fused_kernel, **meta)
    weights = (packed["wa"], packed["wb"], packed["wc"], packed["wf"],
               packed["bias"])

    def call(buffered_weights):
        def const_spec(a):
            # Constant block index -> single buffer is enough (saves VMEM).
            kw = {"pipeline_mode": pl.Buffered(1)} if buffered_weights else {}
            return pl.BlockSpec(a.shape, lambda i: (0, 0), **kw)

        return pl.pallas_call(
            kernel,
            out_shape=jax.ShapeDtypeStruct((B_pad, nout), jnp.float32),
            grid=grid,
            in_specs=[pl.BlockSpec((TB, Dx), lambda i: (i, 0))]
                     + [const_spec(w) for w in weights],
            out_specs=pl.BlockSpec((TB, nout), lambda i: (i, 0)),
            compiler_params=pltpu.CompilerParams(
                dimension_semantics=("parallel",),
                vmem_limit_bytes=32 * 1024 * 1024),
        )(x, *weights)

    try:
        out = call(True)
    except Exception:
        # pipeline_mode=pl.Buffered(1) rejected by this build; default buffering.
        out = call(False)
    return out[:B]


# --------------------------- plain-JAX reference -----------------------------
def reference_forward(raw, x1, x2, m_groups):
    h = jnp.maximum(x1 @ raw["w1a"] + raw["b1a"], 0.0)
    h = h * raw["s1"] + raw["t1"]
    out_one = h @ raw["w1o"] + raw["b1o"]

    outs = [out_one]
    for gi, grp in enumerate(sorted(set(m_groups))):
        idx = jnp.asarray([i for i, g in enumerate(m_groups) if g == grp], jnp.int32)
        xg = x2[:, idx]
        hg = jnp.maximum(xg @ raw["w2a"][gi] + raw["b2a"][gi], 0.0)
        hg = jnp.maximum(hg @ raw["w2b"][gi] + raw["b2b"][gi], 0.0)
        hg = jnp.maximum(hg @ raw["w2c"][gi] + raw["b2c"][gi], 0.0)
        hg = hg * raw["s2"][gi] + raw["t2"][gi]
        outs.append(hg @ raw["w2o"][gi] + raw["b2o"][gi])
    combined = jnp.concatenate(outs, axis=1)
    return combined @ raw["wf"] + raw["bf"]


# ---------------------------------- main -------------------------------------
def _run_case(batch, input_size_model_one, m_groups, output_size, seed):
    key = jax.random.PRNGKey(seed)
    k_x1, k_x2, k_p = jax.random.split(key, 3)
    x1 = jax.random.normal(k_x1, (batch, input_size_model_one), jnp.float32)
    x2 = jax.random.normal(k_x2, (batch, len(m_groups)), jnp.float32)

    raw = build_raw_params(k_p, input_size_model_one, m_groups, output_size)
    packed = pack_params(raw, m_groups, output_size)   # one-time host-side fold

    out = jax.block_until_ready(integrated_forward(packed, x1, x2))
    ref = reference_forward(raw, x1, x2, m_groups)

    assert out.shape == (batch, output_size)
    # bf16 weights/activations with f32 accumulation -> slightly loosened tol.
    assert np.allclose(np.asarray(out), np.asarray(ref), atol=2e-2, rtol=2e-2), (
        float(np.max(np.abs(np.asarray(out) - np.asarray(ref)))))


if __name__ == "__main__":
    input_size_model_one = 16
    m_groups = [0, 0, 1, 1, 1, 2, 2, 2]   # 3 groups with 2/3/3 features of x2
    output_size = 4

    # Main small case (PRNGKey(0)).
    _run_case(8, input_size_model_one, m_groups, output_size, seed=0)
    # Batch not a multiple of 8 -> exercises the host-side batch-pad path.
    _run_case(10, input_size_model_one, m_groups, output_size, seed=1)

    print("KERNEL_OK")
</pallas_src>

<mosaic_0001>
module attributes {stable_mosaic.version = 11 : i64} {
  func.func @_fused_kernel(%arg0: i32, %arg1: memref<8x24xbf16, #tpu.memory_space<vmem>>, %arg2: memref<24x88xbf16, #tpu.memory_space<vmem>>, %arg3: memref<88x76xbf16, #tpu.memory_space<vmem>>, %arg4: memref<76x70xbf16, #tpu.memory_space<vmem>>, %arg5: memref<70x4xbf16, #tpu.memory_space<vmem>>, %arg6: memref<1x512xf32, #tpu.memory_space<vmem>>, %arg7: memref<8x4xf32, #tpu.memory_space<vmem>>) attributes {dimension_semantics = [#tpu.dimension_semantics<parallel>], iteration_bounds = array<i64: 1>, scalar_prefetch = 0 : i64, scratch_operands = 0 : i64, tpu.core_type = #tpu.core_type<tc>, window_params = [{transform_indices = @transform_0, window_bounds = array<i64: 8, 24>}, {pipeline_mode = #tpu.pipeline_mode<synchronous>, transform_indices = @transform_1, window_bounds = array<i64: 24, 88>}, {pipeline_mode = #tpu.pipeline_mode<synchronous>, transform_indices = @transform_2, window_bounds = array<i64: 88, 76>}, {pipeline_mode = #tpu.pipeline_mode<synchronous>, transform_indices = @transform_3, window_bounds = array<i64: 76, 70>}, {pipeline_mode = #tpu.pipeline_mode<synchronous>, transform_indices = @transform_4, window_bounds = array<i64: 70, 4>}, {pipeline_mode = #tpu.pipeline_mode<synchronous>, transform_indices = @transform_5, window_bounds = array<i64: 1, 512>}, {transform_indices = @transform_6, window_bounds = array<i64: 8, 4>}]} {
    %c0 = arith.constant 0 : index
    %c0_0 = arith.constant 0 : index
    %0 = vector.load %arg1[%c0, %c0_0] : memref<8x24xbf16, #tpu.memory_space<vmem>>, vector<8x24xbf16>
    %c0_1 = arith.constant 0 : index
    %c0_2 = arith.constant 0 : index
    %1 = vector.load %arg2[%c0_1, %c0_2] : memref<24x88xbf16, #tpu.memory_space<vmem>>, vector<24x88xbf16>
    %cst = arith.constant dense<0.000000e+00> : vector<8x88xf32>
    %2 = tpu.matmul %0, %1, %cst {dimension_numbers = #tpu.dot_dimension_numbers<[1], [0], [0], [1], [0, 0, 1, 1], [], []>} : vector<8x24xbf16>, vector<24x88xbf16>, vector<8x88xf32> -> vector<8x88xf32>
    %c0_3 = arith.constant 0 : index
    %c0_4 = arith.constant 0 : index
    %3 = vector.load %arg6[%c0_3, %c0_4] : memref<1x512xf32, #tpu.memory_space<vmem>>, vector<1x88xf32>
    %4 = vector.broadcast %3 : vector<1x88xf32> to vector<8x88xf32>
    %5 = arith.addf %2, %4 : vector<8x88xf32>
    %cst_5 = arith.constant 0.000000e+00 : f32
    %6 = vector.broadcast %cst_5 : f32 to vector<8x88xf32>
    %7 = arith.maximumf %5, %6 : vector<8x88xf32>
    %8 = arith.truncf %7 : vector<8x88xf32> to vector<8x88xbf16>
    %c0_6 = arith.constant 0 : index
    %c0_7 = arith.constant 0 : index
    %9 = vector.load %arg3[%c0_6, %c0_7] : memref<88x76xbf16, #tpu.memory_space<vmem>>, vector<88x76xbf16>
    %cst_8 = arith.constant dense<0.000000e+00> : vector<8x76xf32>
    %10 = tpu.matmul %8, %9, %cst_8 {dimension_numbers = #tpu.dot_dimension_numbers<[1], [0], [0], [1], [0, 0, 1, 1], [], []>} : vector<8x88xbf16>, vector<88x76xbf16>, vector<8x76xf32> -> vector<8x76xf32>
    %c0_9 = arith.constant 0 : index
    %c128 = arith.constant 128 : index
    %11 = vector.load %arg6[%c0_9, %c128] : memref<1x512xf32, #tpu.memory_space<vmem>>, vector<1x76xf32>
    %12 = vector.broadcast %11 : vector<1x76xf32> to vector<8x76xf32>
    %13 = arith.addf %10, %12 : vector<8x76xf32>
    %cst_10 = arith.constant 0.000000e+00 : f32
    %14 = vector.broadcast %cst_10 : f32 to vector<8x76xf32>
    %15 = arith.maximumf %13, %14 : vector<8x76xf32>
    %16 = arith.truncf %15 : vector<8x76xf32> to vector<8x76xbf16>
    %c0_11 = arith.constant 0 : index
    %c0_12 = arith.constant 0 : index
    %17 = vector.load %arg4[%c0_11, %c0_12] : memref<76x70xbf16, #tpu.memory_space<vmem>>, vector<76x70xbf16>
    %cst_13 = arith.constant dense<0.000000e+00> : vector<8x70xf32>
    %18 = tpu.matmul %16, %17, %cst_13 {dimension_numbers = #tpu.dot_dimension_numbers<[1], [0], [0], [1], [0, 0, 1, 1], [], []>} : vector<8x76xbf16>, vector<76x70xbf16>, vector<8x70xf32> -> vector<8x70xf32>
    %c0_14 = arith.constant 0 : index
    %c256 = arith.constant 256 : index
    %19 = vector.load %arg6[%c0_14, %c256] : memref<1x512xf32, #tpu.memory_space<vmem>>, vector<1x70xf32>
    %20 = vector.broadcast %19 : vector<1x70xf32> to vector<8x70xf32>
    %21 = arith.addf %18, %20 : vector<8x70xf32>
    %cst_15 = arith.constant 0.000000e+00 : f32
    %22 = vector.broadcast %cst_15 : f32 to vector<8x70xf32>
    %23 = arith.maximumf %21, %22 : vector<8x70xf32>
    %24 = arith.truncf %23 : vector<8x70xf32> to vector<8x70xbf16>
    %c0_16 = arith.constant 0 : index
    %c0_17 = arith.constant 0 : index
    %25 = vector.load %arg5[%c0_16, %c0_17] : memref<70x4xbf16, #tpu.memory_space<vmem>>, vector<70x4xbf16>
    %cst_18 = arith.constant dense<0.000000e+00> : vector<8x4xf32>
    %26 = tpu.matmul %24, %25, %cst_18 {dimension_numbers = #tpu.dot_dimension_numbers<[1], [0], [0], [1], [0, 0, 1, 1], [], []>} : vector<8x70xbf16>, vector<70x4xbf16>, vector<8x4xf32> -> vector<8x4xf32>
    %c0_19 = arith.constant 0 : index
    %c384 = arith.constant 384 : index
    %27 = vector.load %arg6[%c0_19, %c384] : memref<1x512xf32, #tpu.memory_space<vmem>>, vector<1x4xf32>
    %28 = vector.broadcast %27 : vector<1x4xf32> to vector<8x4xf32>
    %29 = arith.addf %26, %28 : vector<8x4xf32>
    %c0_20 = arith.constant 0 : index
    %c0_21 = arith.constant 0 : index
    %30 = vector.load %arg7[%c0_20, %c0_21] : memref<8x4xf32, #tpu.memory_space<vmem>>, vector<8x4xf32>
    tpu.vector_store %arg7[%c0_20, %c0_21], %29 {strides = array<i32>} : memref<8x4xf32, #tpu.memory_space<vmem>>, vector<8x4xf32>,
    return
  }
  func.func @transform_0(%arg0: i32) -> (i32, i32) {
    %c0_i32 = arith.constant 0 : i32
    %c0_i32_0 = arith.constant 0 : i32
    return %arg0, %c0_i32 : i32, i32
  }
  func.func @transform_1(%arg0: i32) -> (i32, i32) {
    %c0_i32 = arith.constant 0 : i32
    %c0_i32_0 = arith.constant 0 : i32
    %c0_i32_1 = arith.constant 0 : i32
    return %c0_i32, %c0_i32_0 : i32, i32
  }
  func.func @transform_2(%arg0: i32) -> (i32, i32) {
    %c0_i32 = arith.constant 0 : i32
    %c0_i32_0 = arith.constant 0 : i32
    %c0_i32_1 = arith.constant 0 : i32
    return %c0_i32, %c0_i32_0 : i32, i32
  }
  func.func @transform_3(%arg0: i32) -> (i32, i32) {
    %c0_i32 = arith.constant 0 : i32
    %c0_i32_0 = arith.constant 0 : i32
    %c0_i32_1 = arith.constant 0 : i32
    return %c0_i32, %c0_i32_0 : i32, i32
  }
  func.func @transform_4(%arg0: i32) -> (i32, i32) {
    %c0_i32 = arith.constant 0 : i32
    %c0_i32_0 = arith.constant 0 : i32
    %c0_i32_1 = arith.constant 0 : i32
    return %c0_i32, %c0_i32_0 : i32, i32
  }
  func.func @transform_5(%arg0: i32) -> (i32, i32) {
    %c0_i32 = arith.constant 0 : i32
    %c0_i32_0 = arith.constant 0 : i32
    %c0_i32_1 = arith.constant 0 : i32
    return %c0_i32, %c0_i32_0 : i32, i32
  }
  func.func @transform_6(%arg0: i32) -> (i32, i32) {
    %c0_i32 = arith.constant 0 : i32
    %c0_i32_0 = arith.constant 0 : i32
    return %arg0, %c0_i32 : i32, i32
  }
}

module attributes {stable_mosaic.version = 11 : i64} {
  func.func @_fused_kernel(%arg0: i32, %arg1: memref<8x24xbf16, #tpu.memory_space<vmem>>, %arg2: memref<24x88xbf16, #tpu.memory_space<vmem>>, %arg3: memref<88x76xbf16, #tpu.memory_space<vmem>>, %arg4: memref<76x70xbf16, #tpu.memory_space<vmem>>, %arg5: memref<70x4xbf16, #tpu.memory_space<vmem>>, %arg6: memref<1x512xf32, #tpu.memory_space<vmem>>, %arg7: memref<8x4xf32, #tpu.memory_space<vmem>>) attributes {dimension_semantics = [#tpu.dimension_semantics<parallel>], iteration_bounds = array<i64: 1>, scalar_prefetch = 0 : i64, scratch_operands = 0 : i64, tpu.core_type = #tpu.core_type<tc>, window_params = [{transform_indices = @transform_0, window_bounds = array<i64: 8, 24>}, {pipeline_mode = #tpu.pipeline_mode<synchronous>, transform_indices = @transform_1, window_bounds = array<i64: 24, 88>}, {pipeline_mode = #tpu.pipeline_mode<synchronous>, transform_indices = @transform_2, window_bounds = array<i64: 88, 76>}, {pipeline_mode = #tpu.pipeline_mode<synchronous>, transform_indices = @transform_3, window_bounds = array<i64: 76, 70>}, {pipeline_mode = #tpu.pipeline_mode<synchronous>, transform_indices = @transform_4, window_bounds = array<i64: 70, 4>}, {pipeline_mode = #tpu.pipeline_mode<synchronous>, transform_indices = @transform_5, window_bounds = array<i64: 1, 512>}, {transform_indices = @transform_6, window_bounds = array<i64: 8, 4>}]} {
    %c0 = arith.constant 0 : index
    %c0_0 = arith.constant 0 : index
    %0 = vector.load %arg1[%c0, %c0_0] : memref<8x24xbf16, #tpu.memory_space<vmem>>, vector<8x24xbf16>
    %c0_1 = arith.constant 0 : index
    %c0_2 = arith.constant 0 : index
    %1 = vector.load %arg2[%c0_1, %c0_2] : memref<24x88xbf16, #tpu.memory_space<vmem>>, vector<24x88xbf16>
    %cst = arith.constant dense<0.000000e+00> : vector<8x88xf32>
    %2 = tpu.matmul %0, %1, %cst {dimension_numbers = #tpu.dot_dimension_numbers<[1], [0], [0], [1], [0, 0, 1, 1], [], []>} : vector<8x24xbf16>, vector<24x88xbf16>, vector<8x88xf32> -> vector<8x88xf32>
    %c0_3 = arith.constant 0 : index
    %c0_4 = arith.constant 0 : index
    %3 = vector.load %arg6[%c0_3, %c0_4] : memref<1x512xf32, #tpu.memory_space<vmem>>, vector<1x88xf32>
    %4 = vector.broadcast %3 : vector<1x88xf32> to vector<8x88xf32>
    %5 = arith.addf %2, %4 : vector<8x88xf32>
    %cst_5 = arith.constant 0.000000e+00 : f32
    %6 = vector.broadcast %cst_5 : f32 to vector<8x88xf32>
    %7 = arith.maximumf %5, %6 : vector<8x88xf32>
    %8 = arith.truncf %7 : vector<8x88xf32> to vector<8x88xbf16>
    %c0_6 = arith.constant 0 : index
    %c0_7 = arith.constant 0 : index
    %9 = vector.load %arg3[%c0_6, %c0_7] : memref<88x76xbf16, #tpu.memory_space<vmem>>, vector<88x76xbf16>
    %cst_8 = arith.constant dense<0.000000e+00> : vector<8x76xf32>
    %10 = tpu.matmul %8, %9, %cst_8 {dimension_numbers = #tpu.dot_dimension_numbers<[1], [0], [0], [1], [0, 0, 1, 1], [], []>} : vector<8x88xbf16>, vector<88x76xbf16>, vector<8x76xf32> -> vector<8x76xf32>
    %c0_9 = arith.constant 0 : index
    %c128 = arith.constant 128 : index
    %11 = vector.load %arg6[%c0_9, %c128] : memref<1x512xf32, #tpu.memory_space<vmem>>, vector<1x76xf32>
    %12 = vector.broadcast %11 : vector<1x76xf32> to vector<8x76xf32>
    %13 = arith.addf %10, %12 : vector<8x76xf32>
    %cst_10 = arith.constant 0.000000e+00 : f32
    %14 = vector.broadcast %cst_10 : f32 to vector<8x76xf32>
    %15 = arith.maximumf %13, %14 : vector<8x76xf32>
    %16 = arith.truncf %15 : vector<8x76xf32> to vector<8x76xbf16>
    %c0_11 = arith.constant 0 : index
    %c0_12 = arith.constant 0 : index
    %17 = vector.load %arg4[%c0_11, %c0_12] : memref<76x70xbf16, #tpu.memory_space<vmem>>, vector<76x70xbf16>
    %cst_13 = arith.constant dense<0.000000e+00> : vector<8x70xf32>
    %18 = tpu.matmul %16, %17, %cst_13 {dimension_numbers = #tpu.dot_dimension_numbers<[1], [0], [0], [1], [0, 0, 1, 1], [], []>} : vector<8x76xbf16>, vector<76x70xbf16>, vector<8x70xf32> -> vector<8x70xf32>
    %c0_14 = arith.constant 0 : index
    %c256 = arith.constant 256 : index
    %19 = vector.load %arg6[%c0_14, %c256] : memref<1x512xf32, #tpu.memory_space<vmem>>, vector<1x70xf32>
    %20 = vector.broadcast %19 : vector<1x70xf32> to vector<8x70xf32>
    %21 = arith.addf %18, %20 : vector<8x70xf32>
    %cst_15 = arith.constant 0.000000e+00 : f32
    %22 = vector.broadcast %cst_15 : f32 to vector<8x70xf32>
    %23 = arith.maximumf %21, %22 : vector<8x70xf32>
    %24 = arith.truncf %23 : vector<8x70xf32> to vector<8x70xbf16>
    %c0_16 = arith.constant 0 : index
    %c0_17 = arith.constant 0 : index
    %25 = vector.load %arg5[%c0_16, %c0_17] : memref<70x4xbf16, #tpu.memory_space<vmem>>, vector<70x4xbf16>
    %cst_18 = arith.constant dense<0.000000e+00> : vector<8x4xf32>
    %26 = tpu.matmul %24, %25, %cst_18 {dimension_numbers = #tpu.dot_dimension_numbers<[1], [0], [0], [1], [0, 0, 1, 1], [], []>} : vector<8x70xbf16>, vector<70x4xbf16>, vector<8x4xf32> -> vector<8x4xf32>
    %c0_19 = arith.constant 0 : index
    %c384 = arith.constant 384 : index
    %27 = vector.load %arg6[%c0_19, %c384] : memref<1x512xf32, #tpu.memory_space<vmem>>, vector<1x4xf32>
    %28 = vector.broadcast %27 : vector<1x4xf32> to vector<8x4xf32>
    %29 = arith.addf %26, %28 : vector<8x4xf32>
    %c0_20 = arith.constant 0 : index
    %c0_21 = arith.constant 0 : index
    %30 = vector.load %arg7[%c0_20, %c0_21] : memref<8x4xf32, #tpu.memory_space<vmem>>, vector<8x4xf32>
    tpu.vector_store %arg7[%c0_20, %c0_21], %29 {strides = array<i32>} : memref<8x4xf32, #tpu.memory_space<vmem>>, vector<8x4xf32>,
    return
  }
  func.func @transform_0(%arg0: i32) -> (i32, i32) {
    %c0_i32 = arith.constant 0 : i32
    %c0_i32_0 = arith.constant 0 : i32
    return %arg0, %c0_i32 : i32, i32
  }
  func.func @transform_1(%arg0: i32) -> (i32, i32) {
    %c0_i32 = arith.constant 0 : i32
    %c0_i32_0 = arith.constant 0 : i32
    %c0_i32_1 = arith.constant 0 : i32
    return %c0_i32, %c0_i32_0 : i32, i32
  }
  func.func @transform_2(%arg0: i32) -> (i32, i32) {
    %c0_i32 = arith.constant 0 : i32
    %c0_i32_0 = arith.constant 0 : i32
    %c0_i32_1 = arith.constant 0 : i32
    return %c0_i32, %c0_i32_0 : i32, i32
  }
  func.func @transform_3(%arg0: i32) -> (i32, i32) {
    %c0_i32 = arith.constant 0 : i32
    %c0_i32_0 = arith.constant 0 : i32
    %c0_i32_1 = arith.constant 0 : i32
    return %c0_i32, %c0_i32_0 : i32, i32
  }
  func.func @transform_4(%arg0: i32) -> (i32, i32) {
    %c0_i32 = arith.constant 0 : i32
    %c0_i32_0 = arith.constant 0 : i32
    %c0_i32_1 = arith.constant 0 : i32
    return %c0_i32, %c0_i32_0 : i32, i32
  }
  func.func @transform_5(%arg0: i32) -> (i32, i32) {
    %c0_i32 = arith.constant 0 : i32
    %c0_i32_0 = arith.constant 0 : i32
    %c0_i32_1 = arith.constant 0 : i32
    return %c0_i32, %c0_i32_0 : i32, i32
  }
  func.func @transform_6(%arg0: i32) -> (i32, i32) {
    %c0_i32 = arith.constant 0 : i32
    %c0_i32_0 = arith.constant 0 : i32
    return %arg0, %c0_i32 : i32, i32
  }
}

</mosaic_0001>

<bundles_post_ra>
// kernel: tpu_custom_call.1
= control target key start
LH: loop header
LB: loop body
LE: loop exit
PB: predicated region body
PF: predicated region fallthrough
CT: control target
= control target key end

     0   :  { %v507_v0 = vmov 0.0   ;;  %vm48_vm0 = vcmask 1043456   ;;  %vm508_vm1 = vmmov 0   ;;  %vm44_vm2 = vcmask 195584   ;;  %s644_s1 = inlined_call_operand.vmem [shape: bf16[24,88], index: 1, kind: input, shape index: {}]   ;;  %s645_s2 = inlined_call_operand.vmem [shape: bf16[88,76], index: 2, kind: input, shape index: {}]   ;;  %s646_s0 = inlined_call_operand.vmem [shape: bf16[8,24], index: 0, kind: input, shape index: {}]   ;;  %s647_s3 = inlined_call_operand.vmem [shape: bf16[76,70], index: 3, kind: input, shape index: {}]   ;;  %s648_s5 = inlined_call_operand.vmem [shape: f32[1,512], index: 5, kind: input, shape index: {}]   ;;  %s649_s4 = inlined_call_operand.vmem [shape: bf16[70,4], index: 4, kind: input, shape index: {}]   ;;  %s650_s6 = inlined_call_operand.vmem [shape: f32[8,4], index: 6, kind: output, shape index: {}]  }
   0x1   :  { %435 = vmatprep.subr.bf16.mxu0 %v507_v0  ;;  %v489_v1 = vld [vmem:[%s644_s1] sm:$0xff]   ;;  %439 = vmatprep.mubr.msk.bf16.mxu0 %vm508_vm1, %v507_v0  ;;  %v490_v2 = vld [vmem:[%s644_s1 + $0x8] ss:$0 sps:$4 sm:$0xff]   ;;  %v493_v7 = vld [vmem:[%s645_s2 + $0x10] sm:$0xff]   ;;  %vm145_vm3 = vcmask 719872   ;;  %vm244_vm4 = vcmask 1045504  }
   0x2   :  { %443 = vmatprep.subr.bf16.mxu1 %v507_v0  ;;  %455 = vmatprep.mubr.msk.bf16.mxu1 %vm508_vm1, %v507_v0  ;;  %v491_v3 = vld [vmem:[%s645_s2] sm:$0xff]   ;;  %v50_v4 = vsel %vm48_vm0, %v490_v2, 0  ;;  %v492_v5 = vld [vmem:[%s645_s2 + $0x8] sm:$0xff]   ;;  %v494_v8 = vld [vmem:[%s645_s2 + $0x18] sm:$0xff]   ;;  %vm240_vm5 = vcmask 621568   ;;  %vm337_vm6 = vcmask 1042432  }
   0x3   :  { %436 = vmatpush3.bf16.msra.mxu0 %v489_v1  ;;  %444 = vmatpush3.bf16.msra.mxu1 %v491_v3  ;;  %v24_v6 = vld [vmem:[%s646_s0] sm:$0xf]  ;;  %v496_v10 = vld [vmem:[%s645_s2 + $0x28] ss:$0 sps:$4 sm:$0xff]   ;;  %v499_v14 = vld [vmem:[%s647_s3 + $0x10] sm:$0xff]   ;;  %vm333_vm7 = vcmask 572416  }
   0x4   :  { %437 = vmatprep.subr.bf16.mxu0 %v507_v0  ;;  %445 = vmatprep.subr.bf16.mxu1 %v507_v0  ;;  %v495_v9 = vld [vmem:[%s645_s2 + $0x20] sm:$0xff]   ;;  %v150_v11 = vsel %vm48_vm0, %v496_v10, 0  ;;  %v498_v13 = vld [vmem:[%s647_s3 + $0x8] sm:$0xff]   ;;  %v500_v23 = vld [vmem:[%s647_s3 + $0x18] sm:$0xff]   ;;  %vm381_vm8 = vcmask 31744  }
   0x5   :  { %v497_v12 = vld [vmem:[%s647_s3] sm:$0xff]   ;;  %v503_v27 = vld [vmem:[%s649_s4 + $0x8] sm:$0xff]   ;;  %v504_v28 = vld [vmem:[%s649_s4 + $0x10] sm:$0xff]  }
   0x6   :  { %v387_v15 = vld [vmem:[%s648_s5] ss:$0 sm:$0xff]  ;;  %v391_v29 = vld [vmem:[%s648_s5 + $0x1] ss:$0 sm:$0xff]  ;;  %v505_v37 = vld [vmem:[%s649_s4 + $0x18] sm:$0xff]  }
   0x7   :  { %438 = vmatpush3.bf16.msra.mxu0 %v50_v4  ;;  %446 = vmatpush3.bf16.msra.mxu1 %v492_v5  ;;  %v501_v24 = vld [vmem:[%s647_s3 + $0x20] sm:$0x3f]  }
   0x8   :  { %459 = vmatprep.subr.bf16.mxu0 %v507_v0  ;;  %447 = vmatprep.subr.bf16.mxu1 %v507_v0  ;;  %v246_v25 = vsel %vm244_vm4, %v501_v24, 0  ;;  %v502_v26 = vld [vmem:[%s649_s4] sm:$0xff]  }
   0x9   :  { %v506_v38 = vld [vmem:[%s649_s4 + $0x20] ss:$0 sps:$4 sm:$0x77]   ;;  %v399_v40 = vld [vmem:[%s648_s5 + $0x2] ss:$0 sm:$0xff] }
   0xa   :  { %440 = vmatmul.mubr.msk.bf16.vlgmr.msra.gmra.mrb[0].mxu0 %vm44_vm2, %v24_v6  ;;  %v339_v39 = vsel %vm337_vm6, %v506_v38, 0  ;;  %v406_v48 = vld [vmem:[%s648_s5 + $0x3] ss:$0 sm:$0xff] }
   0xb   :  { %469 = vmatprep.mubr.msk.bf16.mxu0 %vm508_vm1, %v507_v0  ;;  %448 = vmatpush3.bf16.msra.mxu1 %v493_v7 }
   0xc   :  { %449 = vmatprep.subr.bf16.mxu1 %v507_v0  ;;  %460 = vmatpush3.bf16.msra.mxu0 %v497_v12 }
   0xd   :  { %461 = vmatprep.subr.bf16.mxu0 %v507_v0 }
   0xf   :  { %450 = vmatpush3.bf16.msra.mxu1 %v494_v8 }
  0x10   :  { %451 = vmatprep.subr.bf16.mxu1 %v507_v0  ;;  %462 = vmatpush3.bf16.msra.mxu0 %v498_v13 }
  0x11   :  { %463 = vmatprep.subr.bf16.mxu0 %v507_v0 }
  0x13   :  { %452 = vmatpush3.bf16.msra.mxu1 %v495_v9 }
  0x14   :  { %453 = vmatprep.subr.bf16.mxu1 %v507_v0  ;;  %464 = vmatpush3.bf16.msra.mxu0 %v499_v14 }
  0x15   :  { %465 = vmatprep.subr.bf16.mxu0 %v507_v0 }
  0x17   :  { %454 = vmatpush3.bf16.msra.mxu1 %v150_v11 }
  0x18   :  { %473 = vmatprep.subr.bf16.mxu1 %v507_v0  ;;  %466 = vmatpush3.bf16.msra.mxu0 %v500_v23 }
  0x19   :  { %467 = vmatprep.subr.bf16.mxu0 %v507_v0 }
  0x1c   :  { %468 = vmatpush3.bf16.msra.mxu0 %v246_v25 }
  0xdd   :  { %v86_v16 = vpop.f32.mrb[0].mxu0 }
  0xde   :  { %v87_v17 = vadd.f32 %v387_v15, %v86_v16  ;;  %v441_v18 = vpop.f32.mrb[1].mxu0 }
  0xdf   :  { %v89_v19 = vpop.f32.mrb[2].mxu0 }
  0xe0   :  { %v92_v20 = vmax.f32 %v87_v17, 0.0  ;;  %v442_v21 = vpop.f32.mrb[3].mxu0 }
  0xe2   :  { %v93_v22 = vpack.c.bf16 %v92_v20, %v92_v20 }
  0xe4   :  { %456 = vmatmul.mubr.msk.bf16.vlgmr.msra.gmra.mrb[0].mxu1 %vm145_vm3, %v93_v22 }
  0xe5   :  { %483 = vmatprep.mubr.msk.bf16.mxu1 %vm508_vm1, %v507_v0  ;;  %474 = vmatpush3.bf16.msra.mxu1 %v502_v26 }
  0xe6   :  { %475 = vmatprep.subr.bf16.mxu1 %v507_v0 }
  0xe9   :  { %476 = vmatpush3.bf16.msra.mxu1 %v503_v27 }
  0xea   :  { %477 = vmatprep.subr.bf16.mxu1 %v507_v0 }
  0xed   :  { %478 = vmatpush3.bf16.msra.mxu1 %v504_v28 }
  0xee   :  { %479 = vmatprep.subr.bf16.mxu1 %v507_v0 }
  0xf1   :  { %480 = vmatpush3.bf16.msra.mxu1 %v505_v37 }
  0xf2   :  { %481 = vmatprep.subr.bf16.mxu1 %v507_v0 }
  0xf5   :  { %482 = vmatpush3.bf16.msra.mxu1 %v339_v39 }
 0x1b7   :  { %v186_v30 = vpop.f32.mrb[0].mxu1 }
 0x1b8   :  { %v187_v31 = vadd.f32 %v391_v29, %v186_v30  ;;  %v457_v32 = vpop.f32.mrb[1].mxu1 }
 0x1b9   :  { %v189_v33 = vpop.f32.mrb[2].mxu1 }
 0x1ba   :  { %v192_v34 = vmax.f32 %v187_v31, 0.0  ;;  %v458_v35 = vpop.f32.mrb[3].mxu1 }
 0x1bc   :  { %v193_v36 = vpack.c.bf16 %v192_v34, %v192_v34 }
 0x1be   :  { %470 = vmatmul.mubr.msk.bf16.vlgmr.msra.gmra.mrb[4].mxu0 %vm240_vm5, %v193_v36 }
 0x291   :  { %v282_v41 = vpop.f32.mrb[4].mxu0 }
 0x292   :  { %v283_v42 = vadd.f32 %v399_v40, %v282_v41  ;;  %v471_v43 = vpop.f32.mrb[5].mxu0 }
 0x293   :  { %v285_v44 = vpop.f32.mrb[6].mxu0 }
 0x294   :  { %v288_v45 = vmax.f32 %v283_v42, 0.0  ;;  %v472_v46 = vpop.f32.mrb[7].mxu0 }
 0x296   :  { %v289_v47 = vpack.c.bf16 %v288_v45, %v288_v45 }
 0x298   :  { %484 = vmatmul.mubr.msk.bf16.vlgmr.msra.gmra.mrb[4].mxu1 %vm333_vm7, %v289_v47 }
 0x36b   :  { %v375_v49 = vpop.f32.mrb[4].mxu1 }
 0x36c   :  { %v376_v50 = vadd.f32 %v406_v48, %v375_v49  ;;  %v485_v51 = vpop.f32.mrb[5].mxu1 }
 0x36d   :  { %v378_v52 = vpop.f32.mrb[6].mxu1 }
 0x36e   :  { %382 = vst.msk [vmem:[%s650_s6] sm:$0xff] %vm381_vm8, %v376_v50  ;;  %v486_v53 = vpop.f32.mrb[7].mxu1 }

// kernel: tpu_custom_call.1
= control target key start
LH: loop header
LB: loop body
LE: loop exit
PB: predicated region body
PF: predicated region fallthrough
CT: control target
= control target key end

     0   :  { %v507_v0 = vmov 0.0   ;;  %vm48_vm0 = vcmask 1043456   ;;  %vm508_vm1 = vmmov 0   ;;  %vm44_vm2 = vcmask 195584   ;;  %s644_s1 = inlined_call_operand.vmem [shape: bf16[24,88], index: 1, kind: input, shape index: {}]   ;;  %s645_s2 = inlined_call_operand.vmem [shape: bf16[88,76], index: 2, kind: input, shape index: {}]   ;;  %s646_s0 = inlined_call_operand.vmem [shape: bf16[8,24], index: 0, kind: input, shape index: {}]   ;;  %s647_s3 = inlined_call_operand.vmem [shape: bf16[76,70], index: 3, kind: input, shape index: {}]   ;;  %s648_s5 = inlined_call_operand.vmem [shape: f32[1,512], index: 5, kind: input, shape index: {}]   ;;  %s649_s4 = inlined_call_operand.vmem [shape: bf16[70,4], index: 4, kind: input, shape index: {}]   ;;  %s650_s6 = inlined_call_operand.vmem [shape: f32[8,4], index: 6, kind: output, shape index: {}]  }
   0x1   :  { %435 = vmatprep.subr.bf16.mxu0 %v507_v0  ;;  %v489_v1 = vld [vmem:[%s644_s1] sm:$0xff]   ;;  %439 = vmatprep.mubr.msk.bf16.mxu0 %vm508_vm1, %v507_v0  ;;  %v490_v2 = vld [vmem:[%s644_s1 + $0x8] ss:$0 sps:$4 sm:$0xff]   ;;  %v493_v7 = vld [vmem:[%s645_s2 + $0x10] sm:$0xff]   ;;  %vm145_vm3 = vcmask 719872   ;;  %vm244_vm4 = vcmask 1045504  }
   0x2   :  { %443 = vmatprep.subr.bf16.mxu1 %v507_v0  ;;  %455 = vmatprep.mubr.msk.bf16.mxu1 %vm508_vm1, %v507_v0  ;;  %v491_v3 = vld [vmem:[%s645_s2] sm:$0xff]   ;;  %v50_v4 = vsel %vm48_vm0, %v490_v2, 0  ;;  %v492_v5 = vld [vmem:[%s645_s2 + $0x8] sm:$0xff]   ;;  %v494_v8 = vld [vmem:[%s645_s2 + $0x18] sm:$0xff]   ;;  %vm240_vm5 = vcmask 621568   ;;  %vm337_vm6 = vcmask 1042432  }
   0x3   :  { %436 = vmatpush3.bf16.msra.mxu0 %v489_v1  ;;  %444 = vmatpush3.bf16.msra.mxu1 %v491_v3  ;;  %v24_v6 = vld [vmem:[%s646_s0] sm:$0xf]  ;;  %v496_v10 = vld [vmem:[%s645_s2 + $0x28] ss:$0 sps:$4 sm:$0xff]   ;;  %v499_v14 = vld [vmem:[%s647_s3 + $0x10] sm:$0xff]   ;;  %vm333_vm7 = vcmask 572416  }
   0x4   :  { %437 = vmatprep.subr.bf16.mxu0 %v507_v0  ;;  %445 = vmatprep.subr.bf16.mxu1 %v507_v0  ;;  %v495_v9 = vld [vmem:[%s645_s2 + $0x20] sm:$0xff]   ;;  %v150_v11 = vsel %vm48_vm0, %v496_v10, 0  ;;  %v498_v13 = vld [vmem:[%s647_s3 + $0x8] sm:$0xff]   ;;  %v500_v23 = vld [vmem:[%s647_s3 + $0x18] sm:$0xff]   ;;  %vm381_vm8 = vcmask 31744  }
   0x5   :  { %v497_v12 = vld [vmem:[%s647_s3] sm:$0xff]   ;;  %v503_v27 = vld [vmem:[%s649_s4 + $0x8] sm:$0xff]   ;;  %v504_v28 = vld [vmem:[%s649_s4 + $0x10] sm:$0xff]  }
   0x6   :  { %v387_v15 = vld [vmem:[%s648_s5] ss:$0 sm:$0xff]  ;;  %v391_v29 = vld [vmem:[%s648_s5 + $0x1] ss:$0 sm:$0xff]  ;;  %v505_v37 = vld [vmem:[%s649_s4 + $0x18] sm:$0xff]  }
   0x7   :  { %438 = vmatpush3.bf16.msra.mxu0 %v50_v4  ;;  %446 = vmatpush3.bf16.msra.mxu1 %v492_v5  ;;  %v501_v24 = vld [vmem:[%s647_s3 + $0x20] sm:$0x3f]  }
   0x8   :  { %459 = vmatprep.subr.bf16.mxu0 %v507_v0  ;;  %447 = vmatprep.subr.bf16.mxu1 %v507_v0  ;;  %v246_v25 = vsel %vm244_vm4, %v501_v24, 0  ;;  %v502_v26 = vld [vmem:[%s649_s4] sm:$0xff]  }
   0x9   :  { %v506_v38 = vld [vmem:[%s649_s4 + $0x20] ss:$0 sps:$4 sm:$0x77]   ;;  %v399_v40 = vld [vmem:[%s648_s5 + $0x2] ss:$0 sm:$0xff] }
   0xa   :  { %440 = vmatmul.mubr.msk.bf16.vlgmr.msra.gmra.mrb[0].mxu0 %vm44_vm2, %v24_v6  ;;  %v339_v39 = vsel %vm337_vm6, %v506_v38, 0  ;;  %v406_v48 = vld [vmem:[%s648_s5 + $0x3] ss:$0 sm:$0xff] }
   0xb   :  { %469 = vmatprep.mubr.msk.bf16.mxu0 %vm508_vm1, %v507_v0  ;;  %448 = vmatpush3.bf16.msra.mxu1 %v493_v7 }
   0xc   :  { %449 = vmatprep.subr.bf16.mxu1 %v507_v0  ;;  %460 = vmatpush3.bf16.msra.mxu0 %v497_v12 }
   0xd   :  { %461 = vmatprep.subr.bf16.mxu0 %v507_v0 }
   0xf   :  { %450 = vmatpush3.bf16.msra.mxu1 %v494_v8 }
  0x10   :  { %451 = vmatprep.subr.bf16.mxu1 %v507_v0  ;;  %462 = vmatpush3.bf16.msra.mxu0 %v498_v13 }
  0x11   :  { %463 = vmatprep.subr.bf16.mxu0 %v507_v0 }
  0x13   :  { %452 = vmatpush3.bf16.msra.mxu1 %v495_v9 }
  0x14   :  { %453 = vmatprep.subr.bf16.mxu1 %v507_v0  ;;  %464 = vmatpush3.bf16.msra.mxu0 %v499_v14 }
  0x15   :  { %465 = vmatprep.subr.bf16.mxu0 %v507_v0 }
  0x17   :  { %454 = vmatpush3.bf16.msra.mxu1 %v150_v11 }
  0x18   :  { %473 = vmatprep.subr.bf16.mxu1 %v507_v0  ;;  %466 = vmatpush3.bf16.msra.mxu0 %v500_v23 }
  0x19   :  { %467 = vmatprep.subr.bf16.mxu0 %v507_v0 }
  0x1c   :  { %468 = vmatpush3.bf16.msra.mxu0 %v246_v25 }
  0xdd   :  { %v86_v16 = vpop.f32.mrb[0].mxu0 }
  0xde   :  { %v87_v17 = vadd.f32 %v387_v15, %v86_v16  ;;  %v441_v18 = vpop.f32.mrb[1].mxu0 }
  0xdf   :  { %v89_v19 = vpop.f32.mrb[2].mxu0 }
  0xe0   :  { %v92_v20 = vmax.f32 %v87_v17, 0.0  ;;  %v442_v21 = vpop.f32.mrb[3].mxu0 }
  0xe2   :  { %v93_v22 = vpack.c.bf16 %v92_v20, %v92_v20 }
  0xe4   :  { %456 = vmatmul.mubr.msk.bf16.vlgmr.msra.gmra.mrb[0].mxu1 %vm145_vm3, %v93_v22 }
  0xe5   :  { %483 = vmatprep.mubr.msk.bf16.mxu1 %vm508_vm1, %v507_v0  ;;  %474 = vmatpush3.bf16.msra.mxu1 %v502_v26 }
  0xe6   :  { %475 = vmatprep.subr.bf16.mxu1 %v507_v0 }
  0xe9   :  { %476 = vmatpush3.bf16.msra.mxu1 %v503_v27 }
  0xea   :  { %477 = vmatprep.subr.bf16.mxu1 %v507_v0 }
  0xed   :  { %478 = vmatpush3.bf16.msra.mxu1 %v504_v28 }
  0xee   :  { %479 = vmatprep.subr.bf16.mxu1 %v507_v0 }
  0xf1   :  { %480 = vmatpush3.bf16.msra.mxu1 %v505_v37 }
  0xf2   :  { %481 = vmatprep.subr.bf16.mxu1 %v507_v0 }
  0xf5   :  { %482 = vmatpush3.bf16.msra.mxu1 %v339_v39 }
 0x1b7   :  { %v186_v30 = vpop.f32.mrb[0].mxu1 }
 0x1b8   :  { %v187_v31 = vadd.f32 %v391_v29, %v186_v30  ;;  %v457_v32 = vpop.f32.mrb[1].mxu1 }
 0x1b9   :  { %v189_v33 = vpop.f32.mrb[2].mxu1 }
 0x1ba   :  { %v192_v34 = vmax.f32 %v187_v31, 0.0  ;;  %v458_v35 = vpop.f32.mrb[3].mxu1 }
 0x1bc   :  { %v193_v36 = vpack.c.bf16 %v192_v34, %v192_v34 }
 0x1be   :  { %470 = vmatmul.mubr.msk.bf16.vlgmr.msra.gmra.mrb[4].mxu0 %vm240_vm5, %v193_v36 }
 0x291   :  { %v282_v41 = vpop.f32.mrb[4].mxu0 }
 0x292   :  { %v283_v42 = vadd.f32 %v399_v40, %v282_v41  ;;  %v471_v43 = vpop.f32.mrb[5].mxu0 }
 0x293   :  { %v285_v44 = vpop.f32.mrb[6].mxu0 }
 0x294   :  { %v288_v45 = vmax.f32 %v283_v42, 0.0  ;;  %v472_v46 = vpop.f32.mrb[7].mxu0 }
 0x296   :  { %v289_v47 = vpack.c.bf16 %v288_v45, %v288_v45 }
 0x298   :  { %484 = vmatmul.mubr.msk.bf16.vlgmr.msra.gmra.mrb[4].mxu1 %vm333_vm7, %v289_v47 }
 0x36b   :  { %v375_v49 = vpop.f32.mrb[4].mxu1 }
 0x36c   :  { %v376_v50 = vadd.f32 %v406_v48, %v375_v49  ;;  %v485_v51 = vpop.f32.mrb[5].mxu1 }
 0x36d   :  { %v378_v52 = vpop.f32.mrb[6].mxu1 }
 0x36e   :  { %382 = vst.msk [vmem:[%s650_s6] sm:$0xff] %vm381_vm8, %v376_v50  ;;  %v486_v53 = vpop.f32.mrb[7].mxu1 }

</bundles_post_ra>
